<compile_context>
chip_gen: v7x
topology: tpu7x:2x2x1
jax: 0.10.0
libtpu: 0.0.40
codegen_flags: <defaults>
</compile_context>

<pallas_src>
import jax
import jax.numpy as jnp
from jax.experimental import pallas as pl
from jax.experimental.pallas import tpu as pltpu

P_PAD = 128  # lane-dense output width (multiple of 128)


def _generator_kernel(a_ref, wa_ref, bias_ref, wo_ref, b2_ref, y_ref):
    # a_ref:   (tile_rows, A)   bf16
    # wa_ref:  (A, H)           bf16
    # bias_ref:(1, H)           f32   (= style_vector @ W_s + b1, folded)
    # wo_ref:  (H, P_PAD)       bf16  (zero-padded beyond real pose dim)
    # b2_ref:  (1, P_PAD)       f32
    # y_ref:   (tile_rows, P_PAD) f32
    h = jnp.dot(a_ref[...], wa_ref[...], preferred_element_type=jnp.float32)
    h = jnp.maximum(h + bias_ref[...], 0.0)
    y = jnp.dot(h.astype(wo_ref.dtype), wo_ref[...],
                preferred_element_type=jnp.float32) + b2_ref[...]
    y_ref[...] = y.astype(y_ref.dtype)


def pretrained_generator(a, style_vector, params, *, tile_rows=16):
    """Frozen style-conditioned generator; hot path fused in one Pallas kernel."""
    B, T, A = a.shape
    H = params["W_a"].shape[1]
    P = params["W_out"].shape[1]
    R = B * T
    if R % tile_rows != 0:
        tile_rows = R
    num_tiles = R // tile_rows

    # Fold the rank-1, (b,t)-constant style branch into the hidden bias.
    bias = (style_vector[None, :].astype(jnp.float32)
            @ params["W_s"].astype(jnp.float32)
            + params["b1"].astype(jnp.float32))                     # (1, H) f32

    # Pad the output projection to a lane-dense width (unmasked stores).
    w_out = jnp.zeros((H, P_PAD), jnp.float32).at[:, :P].set(
        params["W_out"].astype(jnp.float32))
    b2 = jnp.zeros((1, P_PAD), jnp.float32).at[:, :P].set(
        params["b2"].astype(jnp.float32))

    # bf16 MXU operands, f32 accumulation.
    a2d = a.reshape(R, A).astype(jnp.bfloat16)
    w_a = params["W_a"].astype(jnp.bfloat16)
    w_out = w_out.astype(jnp.bfloat16)

    cost = pl.CostEstimate(
        flops=2 * R * (A * H + H * P_PAD),
        transcendentals=0,
        bytes_accessed=(a2d.size * 2 + w_a.size * 2 + w_out.size * 2
                        + bias.size * 4 + b2.size * 4 + R * P_PAD * 4),
    )

    y_pad = pl.pallas_call(
        _generator_kernel,
        out_shape=jax.ShapeDtypeStruct((R, P_PAD), jnp.float32),
        grid=(num_tiles,),
        in_specs=[
            pl.BlockSpec((tile_rows, A), lambda i: (i, 0)),    # a (flattened rows)
            pl.BlockSpec((A, H), lambda i: (0, 0)),            # W_a
            pl.BlockSpec((1, H), lambda i: (0, 0)),            # folded bias
            pl.BlockSpec((H, P_PAD), lambda i: (0, 0)),        # W_out (padded)
            pl.BlockSpec((1, P_PAD), lambda i: (0, 0)),        # b2 (padded)
        ],
        out_specs=pl.BlockSpec((tile_rows, P_PAD), lambda i: (i, 0)),
        compiler_params=pltpu.CompilerParams(
            dimension_semantics=("parallel",)),                 # >=2 tiles -> both v7x TCs
        cost_estimate=cost,
    )(a2d, w_a, bias, w_out, b2)

    # Slice away the lane padding and restore (B, T, P).
    return y_pad[:, :P].reshape(B, T, P)


def joint_late_cluster_soft_style_learn_g_forward(a, p, style_vector, params):
    """Mirrors JointLateClusterSoftStyleLearn_G.forward(a, p)."""
    # style_emb = style_vector broadcast over (B, T): mathematically folded into
    # the generator bias inside `pretrained_generator` (no (B,T,S) allocation).
    y_cap = pretrained_generator(a, style_vector, params)

    # TODO(synk): the frozen pretrained_model's internal loss definitions are not
    # part of this module; three representative scalar losses stand in for
    # `internal_losses[:3]`. (Fusing these reductions into the kernel saves one
    # HBM pass of y_cap at real sizes; negligible at these shapes.)
    l_pose = jnp.mean((y_cap - p) ** 2)
    l_style = jnp.mean(style_vector ** 2)   # == mean(style_emb**2), no broadcast needed
    l_reg = jnp.mean(jnp.abs(y_cap))
    internal_losses = (l_pose, l_style, l_reg)[:3]
    return y_cap, internal_losses


def init_params(key, num_styles, audio_feats, pose_feats, hidden):
    k1, k2, k3 = jax.random.split(key, 3)
    scale = 0.1
    return {
        "W_a": scale * jax.random.normal(k1, (audio_feats, hidden), jnp.float32),
        "W_s": scale * jax.random.normal(k2, (num_styles, hidden), jnp.float32),
        "b1": jnp.zeros((1, hidden), jnp.float32),
        "W_out": scale * jax.random.normal(k3, (hidden, pose_feats), jnp.float32),
        "b2": jnp.zeros((1, pose_feats), jnp.float32),
    }


if __name__ == "__main__":
    B, T = 2, 16          # batch, sequence length
    A = 32                # audio feature dim
    P = 16                # pose feature dim
    S = 8                 # len(style_dict)
    H = 32                # hidden dim of frozen generator

    key = jax.random.PRNGKey(0)
    k_a, k_p, k_w = jax.random.split(key, 3)

    a = jax.random.normal(k_a, (B, T, A), jnp.float32)
    p = jax.random.normal(k_p, (B, T, P), jnp.float32)

    # nn.Parameter(torch.ones(len(style_dict)) / len(style_dict))
    style_vector = jnp.ones((S,), jnp.float32) / S

    params = init_params(k_w, S, A, P, H)

    y_cap, internal_losses = jax.jit(
        joint_late_cluster_soft_style_learn_g_forward
    )(a, p, style_vector, params)

    jax.block_until_ready(y_cap)
    jax.block_until_ready(internal_losses)

    assert y_cap.shape == (B, T, P)
    assert len(internal_losses) == 3
    assert all(jnp.isfinite(l) for l in internal_losses)
    print("KERNEL_OK")
</pallas_src>

<mosaic_0001>
module attributes {stable_mosaic.version = 11 : i64} {
  func.func @_generator_kernel(%arg0: i32, %arg1: memref<16x32xbf16, #tpu.memory_space<vmem>>, %arg2: memref<32x32xbf16, #tpu.memory_space<vmem>>, %arg3: memref<1x32xf32, #tpu.memory_space<vmem>>, %arg4: memref<32x128xbf16, #tpu.memory_space<vmem>>, %arg5: memref<1x128xf32, #tpu.memory_space<vmem>>, %arg6: memref<16x128xf32, #tpu.memory_space<vmem>>) attributes {dimension_semantics = [#tpu.dimension_semantics<parallel>], iteration_bounds = array<i64: 2>, scalar_prefetch = 0 : i64, scratch_operands = 0 : i64, tpu.core_type = #tpu.core_type<tc>, window_params = [{transform_indices = @transform_0, window_bounds = array<i64: 16, 32>}, {pipeline_mode = #tpu.pipeline_mode<synchronous>, transform_indices = @transform_1, window_bounds = array<i64: 32, 32>}, {pipeline_mode = #tpu.pipeline_mode<synchronous>, transform_indices = @transform_2, window_bounds = array<i64: 1, 32>}, {pipeline_mode = #tpu.pipeline_mode<synchronous>, transform_indices = @transform_3, window_bounds = array<i64: 32, 128>}, {pipeline_mode = #tpu.pipeline_mode<synchronous>, transform_indices = @transform_4, window_bounds = array<i64: 1, 128>}, {transform_indices = @transform_5, window_bounds = array<i64: 16, 128>}]} {
    %c0 = arith.constant 0 : index
    %c0_0 = arith.constant 0 : index
    %0 = vector.load %arg1[%c0, %c0_0] : memref<16x32xbf16, #tpu.memory_space<vmem>>, vector<16x32xbf16>
    %c0_1 = arith.constant 0 : index
    %c0_2 = arith.constant 0 : index
    %1 = vector.load %arg2[%c0_1, %c0_2] : memref<32x32xbf16, #tpu.memory_space<vmem>>, vector<32x32xbf16>
    %cst = arith.constant dense<0.000000e+00> : vector<16x32xf32>
    %2 = tpu.matmul %0, %1, %cst {dimension_numbers = #tpu.dot_dimension_numbers<[1], [0], [0], [1], [0, 0, 1, 1], [], []>} : vector<16x32xbf16>, vector<32x32xbf16>, vector<16x32xf32> -> vector<16x32xf32>
    %c0_3 = arith.constant 0 : index
    %c0_4 = arith.constant 0 : index
    %3 = vector.load %arg3[%c0_3, %c0_4] : memref<1x32xf32, #tpu.memory_space<vmem>>, vector<1x32xf32>
    %4 = vector.broadcast %3 : vector<1x32xf32> to vector<16x32xf32>
    %5 = arith.addf %2, %4 : vector<16x32xf32>
    %cst_5 = arith.constant 0.000000e+00 : f32
    %6 = vector.broadcast %cst_5 : f32 to vector<16x32xf32>
    %7 = arith.maximumf %5, %6 : vector<16x32xf32>
    %8 = arith.truncf %7 : vector<16x32xf32> to vector<16x32xbf16>
    %c0_6 = arith.constant 0 : index
    %c0_7 = arith.constant 0 : index
    %9 = vector.load %arg4[%c0_6, %c0_7] : memref<32x128xbf16, #tpu.memory_space<vmem>>, vector<32x128xbf16>
    %cst_8 = arith.constant dense<0.000000e+00> : vector<16x128xf32>
    %10 = tpu.matmul %8, %9, %cst_8 {dimension_numbers = #tpu.dot_dimension_numbers<[1], [0], [0], [1], [0, 0, 1, 1], [], []>} : vector<16x32xbf16>, vector<32x128xbf16>, vector<16x128xf32> -> vector<16x128xf32>
    %c0_9 = arith.constant 0 : index
    %c0_10 = arith.constant 0 : index
    %11 = vector.load %arg5[%c0_9, %c0_10] : memref<1x128xf32, #tpu.memory_space<vmem>>, vector<1x128xf32>
    %12 = vector.broadcast %11 : vector<1x128xf32> to vector<16x128xf32>
    %13 = arith.addf %10, %12 : vector<16x128xf32>
    %c0_11 = arith.constant 0 : index
    %c0_12 = arith.constant 0 : index
    %14 = vector.load %arg6[%c0_11, %c0_12] : memref<16x128xf32, #tpu.memory_space<vmem>>, vector<16x128xf32>
    tpu.vector_store %arg6[%c0_11, %c0_12], %13 {strides = array<i32>} : memref<16x128xf32, #tpu.memory_space<vmem>>, vector<16x128xf32>,
    return
  }
  func.func @transform_0(%arg0: i32) -> (i32, i32) {
    %c0_i32 = arith.constant 0 : i32
    %c0_i32_0 = arith.constant 0 : i32
    return %arg0, %c0_i32 : i32, i32
  }
  func.func @transform_1(%arg0: i32) -> (i32, i32) {
    %c0_i32 = arith.constant 0 : i32
    %c0_i32_0 = arith.constant 0 : i32
    %c0_i32_1 = arith.constant 0 : i32
    return %c0_i32, %c0_i32_0 : i32, i32
  }
  func.func @transform_2(%arg0: i32) -> (i32, i32) {
    %c0_i32 = arith.constant 0 : i32
    %c0_i32_0 = arith.constant 0 : i32
    %c0_i32_1 = arith.constant 0 : i32
    return %c0_i32, %c0_i32_0 : i32, i32
  }
  func.func @transform_3(%arg0: i32) -> (i32, i32) {
    %c0_i32 = arith.constant 0 : i32
    %c0_i32_0 = arith.constant 0 : i32
    %c0_i32_1 = arith.constant 0 : i32
    return %c0_i32, %c0_i32_0 : i32, i32
  }
  func.func @transform_4(%arg0: i32) -> (i32, i32) {
    %c0_i32 = arith.constant 0 : i32
    %c0_i32_0 = arith.constant 0 : i32
    %c0_i32_1 = arith.constant 0 : i32
    return %c0_i32, %c0_i32_0 : i32, i32
  }
  func.func @transform_5(%arg0: i32) -> (i32, i32) {
    %c0_i32 = arith.constant 0 : i32
    %c0_i32_0 = arith.constant 0 : i32
    return %arg0, %c0_i32 : i32, i32
  }
}

</mosaic_0001>

<bundles_post_ra>
// kernel: joint_late_cluster_soft_style_learn_g_forward.1
= control target key start
LH: loop header
LB: loop body
LE: loop exit
PB: predicated region body
PF: predicated region fallthrough
CT: control target
= control target key end

     0   :  { %s529_s18 = smov 0   ;;  %s566_s0 = inlined_call_operand.vmem [shape: bf16[32,32], index: 0, kind: input, shape index: {}]   ;;  %s567_s1 = inlined_call_operand.vmem [shape: bf16[32,32], index: 1, kind: input, shape index: {}]   ;;  %s568_s2 = inlined_call_operand.vmem [shape: f32[1,32], index: 2, kind: input, shape index: {}]   ;;  %s569_s3 = inlined_call_operand.vmem [shape: bf16[32,128], index: 3, kind: input, shape index: {}]   ;;  %s570_s4 = inlined_call_operand.vmem [shape: f32[1,128], index: 4, kind: input, shape index: {}]   ;;  %s571_s5 = inlined_call_operand.vmem [shape: f32[32,128], index: 5, kind: output, shape index: {}]  }
   0x1 LB: > { %s432_s19 = sadd.s32 4294967295, %s495_s18   ;;  %p436_p0 = scmp.ge.s32.totalorder %s495_s18, 1  ;;  %s495_s18 = sphi %s529_s18, %s15_s18  }
   0x2   : > { %p188_p1 = scmp.lt.s32.totalorder %s495_s18, 3 }
   0x4   : > { %p189_p2 = pnand %p436_p0, %p188_p1 }
   0x5   : > { %v484_v0 = vld [vmem:[%s567_s1] sm:$0xff] (!%p189_p2)   ;;  %v497_v1 = vmov (!%p189_p2), 0.0   ;;  %v485_v2 = vld [vmem:[%s567_s1 + $0x8] sm:$0xff] (!%p189_p2)   ;;  %vm498_vm0 = vmmov (!%p189_p2), 0   ;;  %s437_s24 = sshll.u32 (!%p189_p2), %s432_s19, 1  ;;  %vm259_vm1 = vcmask (!%p189_p2), 261120  }
   0x6   : > { %192 = sbr.rel (%p189_p2) target bundleno = 454 (0x1c6), region = 40  ;;  %458 = vmatprep.subr.bf16.mxu0 (!%p189_p2), %v497_v1  ;;  %466 = vmatprep.subr.bf16.mxu1 (!%p189_p2), %v497_v1  ;;  %p217_p3 = scmp.lt.s32.totalorder (!%p189_p2), %s437_s24, 3  ;;  %v487_v4 = vld [vmem:[%s569_s3] sm:$0xff] (!%p189_p2)   ;;  %v488_v5 = vld [vmem:[%s569_s3 + $0x8] sm:$0xff] (!%p189_p2)  }
   0x7   : > { %459 = vmatpush3.bf16.msra.mxu0 (!%p189_p2), %v484_v0  ;;  %462 = vmatprep.mubr.msk.bf16.mxu0 (!%p189_p2), %vm498_vm0, %v497_v1  ;;  %v441_v6 = vld [vmem:[%s568_s2] ss:$0 sm:$0xff] (!%p189_p2) }
   0x8   : > { %460 = vmatprep.subr.bf16.mxu0 (!%p189_p2), %v497_v1  ;;  %470 = vmatprep.mubr.msk.bf16.mxu1 (!%p189_p2), %vm498_vm0, %v497_v1  ;;  %v446_v16 = vld [vmem:[%s570_s4] ss:$0 sm:$0xff] (!%p189_p2) }
   0x9   : > { %467 = vmatpush3.bf16.msra.mxu1 (!%p189_p2), %v487_v4 }
   0xa   : > { %468 = vmatprep.subr.bf16.mxu1 (!%p189_p2), %v497_v1 }
   0xb   : > { %461 = vmatpush3.bf16.msra.mxu0 (!%p189_p2), %v485_v2 }
   0xd   : > { %s573_s24 = smov (!%p217_p3, %s437_s24), 3  ;;  %469 = vmatpush3.bf16.msra.mxu1 %v488_v5 }
   0xe   : > { %s438_s25 = sshll.u32 %s573_s24, 2  ;;  %s440_s10 = sshll.u32 %s573_s24, 3 }
   0xf   : > { %s220_s28 = scalar_lea.vmem %s566_s0, %s438_s25  ;;  %s226_s15 = scalar_lea.vmem %s571_s5, %s440_s10 }
  0x10   : > { %v486_v3 = vld [vmem:[%s220_s28] sm:$0xff]  }
  0x11   : > { %463 = vmatmul.mubr.msk.bf16.vlgmr.msra.gmra.mrb[0].mxu0 %vm259_vm1, %v486_v3 }
  0xe4   : > { %v297_v7 = vpop.f32.mrb[0].mxu0 }
  0xe5   : > { %v298_v8 = vadd.f32 %v441_v6, %v297_v7  ;;  %v464_v9 = vpop.f32.mrb[1].mxu0 }
  0xe6   : > { %v300_v10 = vpop.f32.mrb[2].mxu0 }
  0xe7   : > { %v301_v11 = vadd.f32 %v441_v6, %v300_v10  ;;  %v465_v12 = vpop.f32.mrb[3].mxu0  ;;  %v304_v13 = vmax.f32 %v298_v8, 0.0 }
  0xe9   : > { %v305_v14 = vmax.f32 %v301_v11, 0.0 }
  0xeb   : > { %v306_v15 = vpack.c.bf16 %v305_v14, %v304_v13 }
  0xed   : > { %471 = vmatmul.mubr.msk.bf16.vlgmr.msra.gmra.mrb[0].mxu1 %vm259_vm1, %v306_v15 }
 0x1c0   : > { %v367_v17 = vpop.f32.mrb[0].mxu1 }
 0x1c1   : > { %v368_v18 = vadd.f32 %v446_v16, %v367_v17  ;;  %v472_v19 = vpop.f32.mrb[1].mxu1 }
 0x1c2   : > { %v370_v20 = vpop.f32.mrb[2].mxu1 }
 0x1c3   : > { %374 = vst [vmem:[%s226_s15] sm:$0xff] %v368_v18  ;;  %v371_v21 = vadd.f32 %v446_v16, %v370_v20  ;;  %v473_v22 = vpop.f32.mrb[3].mxu1 }
 0x1c5   : > { %375 = vst [vmem:[%s226_s15 + $0x8] sm:$0xff] %v371_v21 }
 0x1c6 PF: > { %s15_s18 = sadd.s32 1, %s495_s18  }
 0x1c7   : > { %p12_p4 = scmp.ge.s32.totalorder %s15_s18, 4  }
 0x1c9   :  { %14 = sbr.rel (!%p12_p4) target bundleno = 1 (0x1), region = 70 }

</bundles_post_ra>
